<compile_context>
chip_gen: v6e
topology: v6e:2x2x1
jax: 0.10.0
libtpu: 0.0.40
codegen_flags: <defaults>
</compile_context>

<pallas_src>
import functools

import jax
import jax.numpy as jnp
from jax.experimental import pallas as pl
from jax.experimental.pallas import tpu as pltpu

LANE = 128
_LANE_CANDIDATES = (4096, 2048, 1024, 512, 256, 128)


def _h_sigmoid_kernel(x_ref, o_ref):
    x = x_ref[...]
    # relu6(x + 3) / 6  ==  clip(x + 3, 0, 6) / 6
    y = jnp.clip(x + 3.0, 0.0, 6.0) / 6.0
    o_ref[...] = y.astype(o_ref.dtype)


@functools.lru_cache(maxsize=1)
def _chip_tuning():
    """Return (tile_bytes, vmem_limit_bytes) tuned per TPU generation."""
    kind = ""
    try:
        kind = jax.devices()[0].device_kind.lower()
    except Exception:  # pragma: no cover - defensive
        pass
    vmem_cap = None
    try:
        vmem_cap = pltpu.get_tpu_info().vmem_capacity_bytes
    except Exception:  # pragma: no cover - defensive
        pass

    if "v5" in kind:
        # v5e: ~0.8 TB/s HBM; 2 MiB tiles (4 double-buffered bufs = 8 MiB)
        # already make the ~0.35 us/step overhead negligible and stay well
        # under the 16 MiB scoped-VMEM default.
        return 2 * 1024 * 1024, None

    # v6e (128 MiB VMEM) / v7x (64 MiB physical): bigger tiles amortize the
    # per-grid-step overhead at 1.3-3.2 TB/s HBM.  Be explicit about the
    # scoped-VMEM budget: worst case 4 bufs x 6 MiB = 24 MiB < 32 MiB.
    tile = 4 * 1024 * 1024
    if vmem_cap is not None and vmem_cap <= (64 << 20):  # v7x
        tile = 6 * 1024 * 1024
    return tile, 32 * 1024 * 1024


def _choose_layout(n: int, elem_bytes: int, tile_bytes: int):
    """Pick (lane width C, block rows br, rows, padded element count)."""
    # 1) Lane width: widest 128-multiple that exactly divides n -> no padding.
    c = None
    if n % LANE == 0:
        for cand in _LANE_CANDIDATES:
            if n % cand == 0:
                c = cand
                break
    if c is None:
        # n is not 128-aligned: widest lane dim that still leaves >= 32 rows
        # of real data; one small pad covers lane alignment.
        c = LANE
        for cand in _LANE_CANDIDATES:
            if n >= cand * 32:
                c = cand
                break

    rows = -(-n // c)          # ceil
    padded_n = rows * c        # == n whenever c divides n

    # 2) Block rows: one block ~ tile_bytes, multiple of 32 (packing friendly
    #    for bf16/int8).  The final grid step may be ragged; Pallas masks it.
    target_rows = max(32, ((tile_bytes // (c * elem_bytes)) // 32) * 32)

    if rows > target_rows:
        br = target_rows
    else:
        slab_bytes = rows * c * elem_bytes
        if slab_bytes > 2 * 1024 * 1024 and rows >= 64:
            # Guarantee >= 2 grid steps so the ("parallel",) axis can feed
            # both TensorCores on v7x.
            half = -(-rows // 2)
            br = ((half + 31) // 32) * 32
        else:
            br = rows          # single full-extent block (always legal)
    return c, br, rows, padded_n


def h_sigmoid(x: jax.Array, *, tile_bytes: int | None = None) -> jax.Array:
    """Elementwise hard-sigmoid: relu6(x + 3) / 6 (float dtypes)."""
    orig_shape = x.shape
    orig_dtype = x.dtype
    n = x.size

    if n == 0:
        return x  # nothing to do; preserve shape/dtype

    default_tile, vmem_limit = _chip_tuning()
    if tile_bytes is None:
        tile_bytes = default_tile

    elem_bytes = jnp.dtype(orig_dtype).itemsize
    c, br, rows, padded_n = _choose_layout(n, elem_bytes, tile_bytes)

    flat = x.reshape(-1)
    if padded_n != n:
        flat = jnp.pad(flat, (0, padded_n - n))
    slab = flat.reshape(rows, c)

    grid = (pl.cdiv(rows, br),)

    out_slab = pl.pallas_call(
        _h_sigmoid_kernel,
        out_shape=jax.ShapeDtypeStruct((rows, c), orig_dtype),
        grid_spec=pltpu.PrefetchScalarGridSpec(
            num_scalar_prefetch=0,
            grid=grid,
            in_specs=[pl.BlockSpec((br, c), lambda i: (i, 0))],
            out_specs=pl.BlockSpec((br, c), lambda i: (i, 0)),
        ),
        compiler_params=pltpu.CompilerParams(
            dimension_semantics=("parallel",),
            vmem_limit_bytes=vmem_limit,
        ),
    )(slab)

    out_flat = out_slab.reshape(-1)
    if padded_n != n:
        out_flat = out_flat[:n]
    return out_flat.reshape(orig_shape)


def _ref(x):
    return jnp.clip(x + 3.0, 0.0, 6.0) / 6.0


if __name__ == "__main__":
    key = jax.random.PRNGKey(0)

    # NCHW, small shapes consistent with the module: batch=2, channels=4, 16x16.
    x = jax.random.normal(key, (2, 4, 16, 16), dtype=jnp.float32) * 4.0
    y = h_sigmoid(x)
    jax.block_until_ready(y)
    assert y.shape == x.shape and y.dtype == x.dtype
    assert jnp.allclose(y, _ref(x), atol=1e-6, rtol=1e-6)

    # Non-128-aligned total size: exercises the fallback lane choice + pad path.
    x2 = jax.random.normal(jax.random.PRNGKey(1), (3, 17, 37, 129), dtype=jnp.float32) * 4.0
    y2 = h_sigmoid(x2)
    jax.block_until_ready(y2)
    assert jnp.allclose(y2, _ref(x2), atol=1e-6, rtol=1e-6)

    # Divisor-aligned size with a deliberately tiny tile: exercises the
    # multi-block grid and the ragged (masked) last block, with zero padding.
    x3 = jax.random.normal(jax.random.PRNGKey(2), (1, 1, 300, 512), dtype=jnp.float32) * 4.0
    y3 = h_sigmoid(x3, tile_bytes=128 * 1024)
    jax.block_until_ready(y3)
    assert jnp.allclose(y3, _ref(x3), atol=1e-6, rtol=1e-6)

    # bf16 path.
    x4 = jax.random.normal(jax.random.PRNGKey(3), (2, 4, 16, 16), dtype=jnp.bfloat16) * 4.0
    y4 = h_sigmoid(x4)
    jax.block_until_ready(y4)
    assert y4.dtype == jnp.bfloat16
    assert jnp.allclose(y4.astype(jnp.float32), _ref(x4.astype(jnp.float32)), atol=1e-2, rtol=1e-2)

    print("KERNEL_OK")
</pallas_src>

<mosaic_0001>
module attributes {stable_mosaic.version = 11 : i64} {
  func.func @_h_sigmoid_kernel(%arg0: i32, %arg1: memref<1x2048xf32, #tpu.memory_space<vmem>>, %arg2: memref<1x2048xf32, #tpu.memory_space<vmem>>) attributes {dimension_semantics = [#tpu.dimension_semantics<parallel>], iteration_bounds = array<i64: 1>, scalar_prefetch = 0 : i64, scratch_operands = 0 : i64, tpu.core_type = #tpu.core_type<tc>, window_params = [{transform_indices = @transform_0, window_bounds = array<i64: 1, 2048>}, {transform_indices = @transform_1, window_bounds = array<i64: 1, 2048>}]} {
    %c0 = arith.constant 0 : index
    %c0_0 = arith.constant 0 : index
    %0 = vector.load %arg1[%c0, %c0_0] : memref<1x2048xf32, #tpu.memory_space<vmem>>, vector<1x2048xf32>
    %cst = arith.constant 3.000000e+00 : f32
    %1 = vector.broadcast %cst : f32 to vector<1x2048xf32>
    %2 = arith.addf %0, %1 : vector<1x2048xf32>
    %cst_1 = arith.constant 0.000000e+00 : f32
    %cst_2 = arith.constant 6.000000e+00 : f32
    %3 = vector.broadcast %cst_1 : f32 to vector<1x2048xf32>
    %4 = arith.maximumf %3, %2 : vector<1x2048xf32>
    %5 = vector.broadcast %cst_2 : f32 to vector<1x2048xf32>
    %6 = arith.minimumf %5, %4 : vector<1x2048xf32>
    %cst_3 = arith.constant 6.000000e+00 : f32
    %7 = vector.broadcast %cst_3 : f32 to vector<1x2048xf32>
    %8 = arith.divf %6, %7 : vector<1x2048xf32>
    %c0_4 = arith.constant 0 : index
    %c0_5 = arith.constant 0 : index
    %9 = vector.load %arg2[%c0_4, %c0_5] : memref<1x2048xf32, #tpu.memory_space<vmem>>, vector<1x2048xf32>
    tpu.vector_store %arg2[%c0_4, %c0_5], %8 {strides = array<i32>} : memref<1x2048xf32, #tpu.memory_space<vmem>>, vector<1x2048xf32>,
    return
  }
  func.func @transform_0(%arg0: i32) -> (i32, i32) {
    %c0_i32 = arith.constant 0 : i32
    %c0_i32_0 = arith.constant 0 : i32
    return %arg0, %c0_i32 : i32, i32
  }
  func.func @transform_1(%arg0: i32) -> (i32, i32) {
    %c0_i32 = arith.constant 0 : i32
    %c0_i32_0 = arith.constant 0 : i32
    return %arg0, %c0_i32 : i32, i32
  }
}

</mosaic_0001>

<bundles_post_ra>
// kernel: tpu_custom_call.1
= control target key start
LH: loop header
LB: loop body
LE: loop exit
PB: predicated region body
PF: predicated region fallthrough
CT: control target
= control target key end

     0   :  { %6 = vsyncpa [#allocation3], 0  ;;  %s113_s0 = inlined_call_operand.hbm [shape: f32[1,2048], index: 0, kind: input, shape index: {}]   ;;  %s114_s1 = inlined_call_operand.hbm [shape: f32[1,2048], index: 1, kind: output, shape index: {}]  }
   0x1   :  { %7 = vsyncpa [#allocation4], 0  ;;  %s95_s6 = smov [#allocation2]  }
   0x2   :  { %s14_s7 = sshll.u32 %s95_s6, 4  ;;  %s15_s7 = int_to_ptr.vmem [resolvable:$true] %s14_s7 }
   0x3   :  { %s59_s8 = scalar_lea.vmem %s15_s7, 256  ;;  %p64_p1 = scmp.lt.s32.totalorder %s15_s7, %s15_s7 }
   0x4   :  { %p60_p0 = scmp.ne.s32.totalorder %s15_s7, %s59_s8  ;;  %p65_p2 = scmp.lt.s32.totalorder %s59_s8, %s59_s8 }
   0x6   :  { %p66_p3 = por %p65_p2, %p64_p1 }
   0x8   :  { %p67_p4 = pnand %p66_p3, %p60_p0 }
   0xa   :  { %70 = shalt.err (!%p67_p4)
}
   0xb   :  { %17 = dma.hbm_to_vmem [thread:$0]  %s113_s0, 256, %s15_s7, [#allocation3]  }
   0xc   :  { %91 = dma.done.wait [#allocation3], 256  }
   0xd   :  { %92 = vsyncadd [#allocation3], 4294967040  ;;  %v21_v0 = vld [vmem:[#allocation2] sm:$0xff]  ;;  %v22_v1 = vld [vmem:[#allocation2 + $0x8] sm:$0xff]  ;;  %s96_s11 = smov [#allocation5]  }
   0xe   :  { %v23_v2 = vadd.f32 3.0, %v21_v0  ;;  %v24_v3 = vadd.f32 3.0, %v22_v1  ;;  %s40_s12 = sshll.u32 %s96_s11, 4  ;;  %s41_s12 = int_to_ptr.vmem [resolvable:$true] %s40_s12 }
   0xf   :  { %s71_s13 = scalar_lea.vmem %s41_s12, 256  ;;  %p76_p6 = scmp.lt.s32.totalorder %s41_s12, %s41_s12 }
  0x10   :  { %v25_v4 = vmax.f32 %v23_v2, 0.0  ;;  %v26_v5 = vmax.f32 %v24_v3, 0.0  ;;  %p72_p5 = scmp.ne.s32.totalorder %s41_s12, %s71_s13  ;;  %p77_p7 = scmp.lt.s32.totalorder %s71_s13, %s71_s13 }
  0x12   :  { %v27_v6 = vmin.f32 %v25_v4, 6.0  ;;  %v28_v7 = vmin.f32 %v26_v5, 6.0  ;;  %p78_p8 = por %p77_p7, %p76_p6 }
  0x14   :  { %v30_v8 = vmul.f32 0.16666667, %v27_v6  ;;  %v31_v9 = vmul.f32 0.16666667, %v28_v7  ;;  %p79_p9 = pnand %p78_p8, %p72_p5 }
  0x16   :  { %32 = vst [vmem:[#allocation5] sm:$0xff] %v30_v8  ;;  %33 = vst [vmem:[#allocation5 + $0x8] sm:$0xff] %v31_v9 }
  0x17   :  { %82 = shalt.err (!%p79_p9)
}
  0x18   :  { %43 = dma.vmem_to_hbm [thread:$0]  %s41_s12, 256, %s114_s1, [#allocation4]  }
  0x19   :  { %93 = dma.done.wait [#allocation4], 256  }
  0x1a   :  { %94 = vsyncadd [#allocation4], 4294967040 }
  0x1b   :  { %47 = vsyncpa [#allocation3], 1 }
  0x1c   :  { %48 = vsyncpa [#allocation4], 1 }

</bundles_post_ra>
